<compile_context>
chip_gen: v5e
topology: v5e:2x2
jax: 0.10.0
libtpu: 0.0.40
codegen_flags: <defaults>
</compile_context>

<pallas_src>
import functools

import jax
import jax.numpy as jnp
import numpy as np
from jax.experimental import pallas as pl
from jax.experimental.pallas import tpu as pltpu

EPS = 1e-8


def _round_up(x, m):
    return ((x + m - 1) // m) * m


def _sss_kernel(frames_ref, basis_ref, out_ref, acc_ref, *, tm, npad, alpha):
    i = pl.program_id(0)

    @pl.when(i == 0)
    def _init():
        acc_ref[...] = jnp.zeros_like(acc_ref)

    # Single MXU matmul per tile: (2*tm, n_fft) @ (n_fft, 2*npad).
    # Rows [0:tm] are pred frames, rows [tm:2*tm] are the matching target
    # frames; columns [0:npad] are the (windowed) cos basis, [npad:] the sin.
    z = jnp.dot(frames_ref[...], basis_ref[...],
                preferred_element_type=jnp.float32)

    re = z[:, :npad]
    im = z[:, npad:]
    mag = jnp.sqrt(re * re + im * im)          # (2*tm, npad), power=1 magnitude

    s_p = mag[:tm, :]
    s_t = mag[tm:, :]

    lin = jnp.abs(s_p - s_t)
    # log2(a+eps) - log2(b+eps) == log2((a+eps)/(b+eps)): one EUP log2 instead
    # of two. Zero-padded rows/columns give s_p == s_t == 0 -> ratio 1 -> 0.
    lg = jnp.abs(jnp.log2((s_t + EPS) / (s_p + EPS)))

    # Element-wise accumulation only; defer the cross-lane reduce to the end.
    acc_ref[...] += lin + alpha * lg

    @pl.when(i == pl.num_programs(0) - 1)
    def _finalize():
        out_ref[0, 0] = jnp.sum(acc_ref[...])


def _frame(x, n_fft, hop):
    """Center (reflect) pad and slice into overlapping frames: (B,T)->(B,F,n_fft)."""
    pad = n_fft // 2
    xp = jnp.pad(x, ((0, 0), (pad, pad)), mode="reflect")
    num_frames = 1 + x.shape[1] // hop
    starts = jnp.arange(num_frames) * hop
    idx = starts[:, None] + jnp.arange(n_fft)[None, :]
    return xp[:, idx], num_frames


def _windowed_dft_basis(n_fft):
    """Hann-window-folded real-DFT basis, cos|sin concatenated, lane-padded."""
    n_freq = n_fft // 2 + 1
    npad = max(128, _round_up(n_freq, 128))
    n = np.arange(n_fft)[:, None]
    k = np.arange(n_freq)[None, :]
    ang = 2.0 * np.pi * n * k / n_fft
    # torch.hann_window(n_fft, periodic=True)
    w = 0.5 * (1.0 - np.cos(2.0 * np.pi * np.arange(n_fft) / n_fft))
    cos_m = np.zeros((n_fft, npad), np.float32)
    sin_m = np.zeros((n_fft, npad), np.float32)
    cos_m[:, :n_freq] = np.cos(ang)
    sin_m[:, :n_freq] = -np.sin(ang)
    basis = np.concatenate([cos_m, sin_m], axis=1) * w[:, None]
    return jnp.asarray(basis, dtype=jnp.float32), n_freq, npad


@functools.partial(jax.jit, static_argnames=("n_fft", "hop", "alpha"))
def sss_loss(pred, target, *, n_fft=64, hop=16, alpha=1.0):
    """pred, target: (B, T) float32 waveforms."""
    B, _ = pred.shape
    frames_p, num_frames = _frame(pred.astype(jnp.float32), n_fft, hop)
    frames_t, _ = _frame(target.astype(jnp.float32), n_fft, hop)

    M = B * num_frames
    frames_p = frames_p.reshape(M, n_fft)
    frames_t = frames_t.reshape(M, n_fft)

    # Row-tile size (multiple of 8); pad M with zero frames (numerically free:
    # zero frames contribute 0 to both loss terms).
    tm = min(256, _round_up(M, 8))
    m_pad = _round_up(M, tm)
    if m_pad != M:
        frames_p = jnp.pad(frames_p, ((0, m_pad - M), (0, 0)))
        frames_t = jnp.pad(frames_t, ((0, m_pad - M), (0, 0)))
    nt = m_pad // tm

    # Interleave pred/target per tile: tile i = [tm pred rows ; tm target rows]
    # of the same frames -> single matmul per tile, single input DMA stream.
    frames = jnp.concatenate(
        [frames_p.reshape(nt, 1, tm, n_fft),
         frames_t.reshape(nt, 1, tm, n_fft)],
        axis=1,
    ).reshape(nt * 2 * tm, n_fft)

    basis, n_freq, npad = _windowed_dft_basis(n_fft)

    kernel = functools.partial(_sss_kernel, tm=tm, npad=npad, alpha=float(alpha))

    total = pl.pallas_call(
        kernel,
        out_shape=jax.ShapeDtypeStruct((1, 1), jnp.float32),
        grid_spec=pltpu.PrefetchScalarGridSpec(
            num_scalar_prefetch=0,
            grid=(nt,),
            in_specs=[
                pl.BlockSpec((2 * tm, n_fft), lambda i: (i, 0)),
                pl.BlockSpec((n_fft, 2 * npad), lambda i: (0, 0)),
            ],
            out_specs=pl.BlockSpec(memory_space=pltpu.SMEM),
            scratch_shapes=[pltpu.VMEM((tm, npad), jnp.float32)],
        ),
        compiler_params=pltpu.CompilerParams(
            dimension_semantics=("arbitrary",),
        ),
    )(frames, basis)

    n_elems = jnp.float32(B * num_frames * n_freq)
    return total[0, 0] / n_elems


def _reference(pred, target, *, n_fft=64, hop=16, alpha=1.0):
    """Pure-JAX reference of the module's math (sanity check)."""
    def spec(x):
        pad = n_fft // 2
        xp = jnp.pad(x, ((0, 0), (pad, pad)), mode="reflect")
        F_ = 1 + x.shape[1] // hop
        starts = jnp.arange(F_) * hop
        idx = starts[:, None] + jnp.arange(n_fft)[None, :]
        frames = xp[:, idx]
        n = np.arange(n_fft, dtype=np.float32)
        w = jnp.asarray(0.5 * (1.0 - np.cos(2.0 * np.pi * n / n_fft)))
        fw = frames * w
        nn = np.arange(n_fft)[:, None]
        kk = np.arange(n_fft // 2 + 1)[None, :]
        ang = 2.0 * np.pi * nn * kk / n_fft
        cos_m = jnp.asarray(np.cos(ang), jnp.float32)
        sin_m = jnp.asarray(-np.sin(ang), jnp.float32)
        re = jnp.einsum("bfn,nk->bfk", fw, cos_m)
        im = jnp.einsum("bfn,nk->bfk", fw, sin_m)
        return jnp.sqrt(re * re + im * im)

    s_p, s_t = spec(pred), spec(target)
    lin = jnp.mean(jnp.abs(s_p - s_t))
    lg = jnp.mean(jnp.abs(jnp.log2(s_t + EPS) - jnp.log2(s_p + EPS)))
    return lin + alpha * lg


if __name__ == "__main__":
    key = jax.random.PRNGKey(0)
    k1, k2 = jax.random.split(key)
    B, T = 2, 256  # n_fft=64, hop=16 -> (B, 33 freq, 17 frames) spectrograms
    pred = jax.random.normal(k1, (B, T), dtype=jnp.float32)
    target = jax.random.normal(k2, (B, T), dtype=jnp.float32)

    loss = sss_loss(pred, target, n_fft=64, hop=16, alpha=1.0)
    loss = jax.block_until_ready(loss)

    ref = _reference(pred, target, n_fft=64, hop=16, alpha=1.0)
    assert jnp.allclose(loss, ref, rtol=1e-4, atol=1e-4), (loss, ref)

    print("KERNEL_OK")
</pallas_src>

<mosaic_0001>
module attributes {stable_mosaic.version = 11 : i64} {
  func.func @_sss_kernel(%arg0: i32, %arg1: memref<80x64xf32, #tpu.memory_space<vmem>>, %arg2: memref<64x256xf32, #tpu.memory_space<vmem>>, %arg3: memref<1x1xf32, #tpu.memory_space<smem>>, %arg4: memref<40x128xf32, #tpu.memory_space<vmem>>) attributes {dimension_semantics = [#tpu.dimension_semantics<arbitrary>], iteration_bounds = array<i64: 1>, scalar_prefetch = 0 : i64, scratch_operands = 1 : i64, tpu.core_type = #tpu.core_type<tc>, window_params = [{transform_indices = @transform_0, window_bounds = array<i64: 80, 64>}, {pipeline_mode = #tpu.pipeline_mode<synchronous>, transform_indices = @transform_1, window_bounds = array<i64: 64, 256>}, {transform_indices = @transform_2, window_bounds = array<i64: 1, 1>}]} {
    %c0_i32 = arith.constant 0 : i32
    %0 = arith.cmpi eq, %arg0, %c0_i32 : i32
    %1 = arith.extui %0 : i1 to i32
    %c0_i32_0 = arith.constant 0 : i32
    %2 = arith.cmpi ne, %1, %c0_i32_0 : i32
    scf.if %2 {
      %cst_14 = arith.constant 0.000000e+00 : f32
      %35 = vector.broadcast %cst_14 : f32 to vector<40x128xf32>
      %c0_15 = arith.constant 0 : index
      %c0_16 = arith.constant 0 : index
      %36 = vector.load %arg4[%c0_15, %c0_16] : memref<40x128xf32, #tpu.memory_space<vmem>>, vector<40x128xf32>
      tpu.vector_store %arg4[%c0_15, %c0_16], %35 {strides = array<i32>} : memref<40x128xf32, #tpu.memory_space<vmem>>, vector<40x128xf32>,
    } else {
    }
    %c0 = arith.constant 0 : index
    %c0_1 = arith.constant 0 : index
    %3 = vector.load %arg1[%c0, %c0_1] : memref<80x64xf32, #tpu.memory_space<vmem>>, vector<80x64xf32>
    %c0_2 = arith.constant 0 : index
    %c0_3 = arith.constant 0 : index
    %4 = vector.load %arg2[%c0_2, %c0_3] : memref<64x256xf32, #tpu.memory_space<vmem>>, vector<64x256xf32>
    %cst = arith.constant dense<0.000000e+00> : vector<80x256xf32>
    %5 = tpu.matmul %3, %4, %cst {dimension_numbers = #tpu.dot_dimension_numbers<[1], [0], [0], [1], [0, 0, 1, 1], [], []>} : vector<80x64xf32>, vector<64x256xf32>, vector<80x256xf32> -> vector<80x256xf32>
    %6 = vector.extract_strided_slice %5 {offsets = [0, 0], sizes = [80, 128], strides = [1, 1]} : vector<80x256xf32> to vector<80x128xf32>
    %7 = vector.extract_strided_slice %5 {offsets = [0, 128], sizes = [80, 128], strides = [1, 1]} : vector<80x256xf32> to vector<80x128xf32>
    %8 = arith.mulf %6, %6 : vector<80x128xf32>
    %9 = arith.mulf %7, %7 : vector<80x128xf32>
    %10 = arith.addf %8, %9 : vector<80x128xf32>
    %11 = math.sqrt %10 : vector<80x128xf32>
    %12 = vector.extract_strided_slice %11 {offsets = [0, 0], sizes = [40, 128], strides = [1, 1]} : vector<80x128xf32> to vector<40x128xf32>
    %13 = vector.extract_strided_slice %11 {offsets = [40, 0], sizes = [40, 128], strides = [1, 1]} : vector<80x128xf32> to vector<40x128xf32>
    %14 = arith.subf %12, %13 : vector<40x128xf32>
    %15 = math.absf %14 : vector<40x128xf32>
    %cst_4 = arith.constant 9.99999993E-9 : f32
    %16 = vector.broadcast %cst_4 : f32 to vector<40x128xf32>
    %17 = arith.addf %13, %16 : vector<40x128xf32>
    %cst_5 = arith.constant 9.99999993E-9 : f32
    %18 = vector.broadcast %cst_5 : f32 to vector<40x128xf32>
    %19 = arith.addf %12, %18 : vector<40x128xf32>
    %20 = arith.divf %17, %19 : vector<40x128xf32>
    %21 = math.log %20 : vector<40x128xf32>
    %cst_6 = arith.constant 2.000000e+00 : f32
    %22 = math.log %cst_6 : f32
    %23 = vector.broadcast %22 : f32 to vector<40x128xf32>
    %24 = arith.divf %21, %23 : vector<40x128xf32>
    %25 = math.absf %24 : vector<40x128xf32>
    %c0_7 = arith.constant 0 : index
    %c0_8 = arith.constant 0 : index
    %26 = vector.load %arg4[%c0_7, %c0_8] : memref<40x128xf32, #tpu.memory_space<vmem>>, vector<40x128xf32>
    %cst_9 = arith.constant 1.000000e+00 : f32
    %27 = vector.broadcast %cst_9 : f32 to vector<40x128xf32>
    %28 = arith.mulf %27, %25 : vector<40x128xf32>
    %29 = arith.addf %15, %28 : vector<40x128xf32>
    %30 = arith.addf %26, %29 : vector<40x128xf32>
    %c0_10 = arith.constant 0 : index
    %c0_11 = arith.constant 0 : index
    %31 = vector.load %arg4[%c0_10, %c0_11] : memref<40x128xf32, #tpu.memory_space<vmem>>, vector<40x128xf32>
    tpu.vector_store %arg4[%c0_10, %c0_11], %30 {strides = array<i32>} : memref<40x128xf32, #tpu.memory_space<vmem>>, vector<40x128xf32>,
    %c0_i32_12 = arith.constant 0 : i32
    %32 = arith.cmpi eq, %arg0, %c0_i32_12 : i32
    %33 = arith.extui %32 : i1 to i32
    %c0_i32_13 = arith.constant 0 : i32
    %34 = arith.cmpi ne, %33, %c0_i32_13 : i32
    scf.if %34 {
      %c0_14 = arith.constant 0 : index
      %c0_15 = arith.constant 0 : index
      %35 = vector.load %arg4[%c0_14, %c0_15] : memref<40x128xf32, #tpu.memory_space<vmem>>, vector<40x128xf32>
      %36 = vector.shape_cast %35 : vector<40x128xf32> to vector<1x40x128xf32>
      %cst_16 = arith.constant dense<0.000000e+00> : vector<1xf32>
      %37 = vector.multi_reduction <add>, %36, %cst_16 [1, 2] : vector<1x40x128xf32> to vector<1xf32>
      %38 = vector.shape_cast %37 : vector<1xf32> to vector<1x1x1xf32>
      %39 = vector.extract %38[0, 0, 0] : f32 from vector<1x1x1xf32>
      %c0_17 = arith.constant 0 : index
      %c0_18 = arith.constant 0 : index
      %40 = memref.load %arg3[%c0_17, %c0_18] : memref<1x1xf32, #tpu.memory_space<smem>>
      memref.store %39, %arg3[%c0_17, %c0_18] : memref<1x1xf32, #tpu.memory_space<smem>>
    } else {
    }
    return
  }
  func.func @transform_0(%arg0: i32) -> (i32, i32) {
    %c0_i32 = arith.constant 0 : i32
    %c0_i32_0 = arith.constant 0 : i32
    return %arg0, %c0_i32 : i32, i32
  }
  func.func @transform_1(%arg0: i32) -> (i32, i32) {
    %c0_i32 = arith.constant 0 : i32
    %c0_i32_0 = arith.constant 0 : i32
    %c0_i32_1 = arith.constant 0 : i32
    return %c0_i32, %c0_i32_0 : i32, i32
  }
  func.func @transform_2(%arg0: i32) -> (i32, i32) {
    %c0_i32 = arith.constant 0 : i32
    %c0_i32_0 = arith.constant 0 : i32
    %c0_i32_1 = arith.constant 0 : i32
    return %c0_i32, %c0_i32_0 : i32, i32
  }
}

</mosaic_0001>

<bundles_post_ra>
// kernel: sss_loss.1
= control target key start
LH: loop header
LB: loop body
LE: loop exit
PB: predicated region body
PF: predicated region fallthrough
CT: control target
= control target key end

     0   :  { %s952_s0 = inlined_call_operand.vmem [shape: f32[80,64], index: 0, kind: input, shape index: {}]   ;;  %s953_s1 = inlined_call_operand.vmem [shape: f32[64,256], index: 1, kind: input, shape index: {}]   ;;  %s954_s2 = inlined_call_operand.hbm [shape: f32[1,1], index: 2, kind: output, shape index: {}]  }
   0x1   :  { %v45_v0 = vld [vmem:[%s953_s1 + $0x70] sm:$0xff]  ;;  %v46_v1 = vld [vmem:[%s953_s1 + $0x78] sm:$0xff]  ;;  %v43_v2 = vld [vmem:[%s953_s1 + $0x60] sm:$0xff] }
   0x2   :  { %86 = vmatpush.msra.mxu0 %v45_v0  ;;  %522 = vmatpush.msra.mxu2 %v45_v0  ;;  %v44_v3 = vld [vmem:[%s953_s1 + $0x68] sm:$0xff]  ;;  %v41_v4 = vld [vmem:[%s953_s1 + $0x50] sm:$0xff]  ;;  %v42_v5 = vld [vmem:[%s953_s1 + $0x58] sm:$0xff] }
   0x3   :  { %133 = vmatpush.msra.mxu1 %v46_v1  ;;  %530 = vmatpush.msra.mxu3 %v46_v1  ;;  %v39_v6 = vld [vmem:[%s953_s1 + $0x40] sm:$0xff]  ;;  %v40_v7 = vld [vmem:[%s953_s1 + $0x48] sm:$0xff]  ;;  %v37_v8 = vld [vmem:[%s953_s1 + $0x30] sm:$0xff] }
   0x4   :  { %87 = vmatpush.msra.mxu0 %v43_v2  ;;  %523 = vmatpush.msra.mxu2 %v43_v2  ;;  %v38_v9 = vld [vmem:[%s953_s1 + $0x38] sm:$0xff] }
   0x5   :  { %134 = vmatpush.msra.mxu1 %v44_v3  ;;  %531 = vmatpush.msra.mxu3 %v44_v3 }
   0x6   :  { %88 = vmatpush.msra.mxu0 %v41_v4  ;;  %524 = vmatpush.msra.mxu2 %v41_v4 }
   0x7   :  { %135 = vmatpush.msra.mxu1 %v42_v5  ;;  %532 = vmatpush.msra.mxu3 %v42_v5 }
   0x8   :  { %89 = vmatpush.msra.mxu0 %v39_v6  ;;  %525 = vmatpush.msra.mxu2 %v39_v6 }
   0x9   :  { %7 = vsyncpa [#allocation4], 0  ;;  %136 = vmatpush.msra.mxu1 %v40_v7  ;;  %533 = vmatpush.msra.mxu3 %v40_v7  ;;  %v35_v10 = vld [vmem:[%s953_s1 + $0x20] sm:$0xff]  ;;  %v36_v11 = vld [vmem:[%s953_s1 + $0x28] sm:$0xff]  ;;  %vm47_vm0 = vcmask 523264   ;;  %s492_s5 = sshll.u32 %s954_s2, 4  ;;  %s493_s5 = int_to_ptr.hbm [resolvable:$true] %s492_s5 }
   0xa   :  { %90 = vmatpush.msra.mxu0 %v37_v8  ;;  %526 = vmatpush.msra.mxu2 %v37_v8  ;;  %v33_v12 = vld [vmem:[%s953_s1 + $0x10] sm:$0xff]  ;;  %v34_v13 = vld [vmem:[%s953_s1 + $0x18] sm:$0xff]  ;;  %v31_v14 = vld [vmem:[%s953_s1] sm:$0xff]  ;;  %s599_s7 = smov [#allocation3]  }
   0xb   :  { %137 = vmatpush.msra.mxu1 %v38_v9  ;;  %534 = vmatpush.msra.mxu3 %v38_v9  ;;  %v32_v15 = vld [vmem:[%s953_s1 + $0x8] sm:$0xff]  ;;  %v21_v16 = vld [vmem:[%s952_s0] sm:$0xff]  ;;  %v27_v19 = vld [vmem:[%s952_s0 + $0x30] sm:$0xff] }
   0xc   :  { %91 = vmatpush.msra.mxu0 %v35_v10  ;;  %527 = vmatpush.msra.mxu2 %v35_v10  ;;  %v26_v17 = vld [vmem:[%s952_s0 + $0x28] sm:$0xff]  ;;  %v23_v20 = vld [vmem:[%s952_s0 + $0x10] sm:$0xff]  ;;  %v28_v21 = vld [vmem:[%s952_s0 + $0x38] sm:$0xff] }
   0xd   :  { %138 = vmatpush.msra.mxu1 %v36_v11  ;;  %535 = vmatpush.msra.mxu3 %v36_v11  ;;  %v22_v18 = vld [vmem:[%s952_s0 + $0x8] sm:$0xff]  ;;  %v24_v22 = vld [vmem:[%s952_s0 + $0x18] sm:$0xff]  ;;  %v29_v23 = vld [vmem:[%s952_s0 + $0x40] sm:$0xff] }
   0xe   :  { %92 = vmatpush.msra.mxu0 %v33_v12  ;;  %528 = vmatpush.msra.mxu2 %v33_v12  ;;  %v25_v24 = vld [vmem:[%s952_s0 + $0x20] sm:$0xff]  ;;  %v30_v25 = vld [vmem:[%s952_s0 + $0x48] sm:$0xff] }
   0xf   :  { %139 = vmatpush.msra.mxu1 %v34_v13  ;;  %536 = vmatpush.msra.mxu3 %v34_v13 }
  0x10   :  { %93 = vmatpush.msra.mxu0 %v31_v14  ;;  %529 = vmatpush.msra.mxu2 %v31_v14 }
  0x11   :  { %140 = vmatpush.msra.mxu1 %v32_v15  ;;  %537 = vmatpush.msra.mxu3 %v32_v15 }
  0x12   :  { %502 = vmatmul.msk.f32.vlgmr.msra.gmra.mxu0 %vm47_vm0, %v21_v16  ;;  %507 = vmatmul.msk.f32.vlgmr.msra.gmra.mxu2 %vm47_vm0, %v26_v17 }
  0x13   :  { %512 = vmatmul.msk.f32.vlgmr.msra.gmra.mxu1 %vm47_vm0, %v21_v16  ;;  %517 = vmatmul.msk.f32.vlgmr.msra.gmra.mxu3 %vm47_vm0, %v26_v17 }
  0x1a   :  { %503 = vmatmul.msk.f32.gmra.mxu0 %vm47_vm0, %v22_v18  ;;  %508 = vmatmul.msk.f32.gmra.mxu2 %vm47_vm0, %v27_v19 }
  0x1b   :  { %513 = vmatmul.msk.f32.gmra.mxu1 %vm47_vm0, %v22_v18  ;;  %518 = vmatmul.msk.f32.gmra.mxu3 %vm47_vm0, %v27_v19 }
  0x22   :  { %504 = vmatmul.msk.f32.gmra.mxu0 %vm47_vm0, %v23_v20  ;;  %509 = vmatmul.msk.f32.gmra.mxu2 %vm47_vm0, %v28_v21 }
  0x23   :  { %514 = vmatmul.msk.f32.gmra.mxu1 %vm47_vm0, %v23_v20  ;;  %519 = vmatmul.msk.f32.gmra.mxu3 %vm47_vm0, %v28_v21 }
  0x2a   :  { %505 = vmatmul.msk.f32.gmra.mxu0 %vm47_vm0, %v24_v22  ;;  %510 = vmatmul.msk.f32.gmra.mxu2 %vm47_vm0, %v29_v23 }
  0x2b   :  { %515 = vmatmul.msk.f32.gmra.mxu1 %vm47_vm0, %v24_v22  ;;  %520 = vmatmul.msk.f32.gmra.mxu3 %vm47_vm0, %v29_v23 }
  0x32   :  { %506 = vmatmul.msk.f32.gmra.mxu0 %vm47_vm0, %v25_v24  ;;  %511 = vmatmul.msk.f32.gmra.mxu2 %vm47_vm0, %v30_v25 }
  0x33   :  { %516 = vmatmul.msk.f32.gmra.mxu1 %vm47_vm0, %v25_v24  ;;  %521 = vmatmul.msk.f32.gmra.mxu3 %vm47_vm0, %v30_v25 }
  0x8f   :  { %v95_v26 = vpop.f32.mrf.mxu0 }
  0x90   :  { %v172_v27 = vmul.f32 %v95_v26, %v95_v26  ;;  %v142_v28 = vpop.f32.mrf.mxu1 }
  0x91   :  { %v182_v29 = vmul.f32 %v142_v28, %v142_v28 }
  0x93   :  { %v713_v30 = vadd.f32 %v182_v29, %v172_v27 }
  0x95   :  { %542 = vrsqrt.f32 %v713_v30  ;;  %v110_v31 = vpop.f32.mrf.mxu2  ;;  %vm209_vm1 = vcmp.eq.f32.partialorder %v713_v30, inf  ;;  %v212_v24 = vand.u32 2147483648, %v713_v30  ;;  %vm211_vm2 = vcmp.eq.f32.partialorder %v713_v30, 0.0 }
  0x96   :  { %v177_v32 = vmul.f32 %v110_v31, %v110_v31  ;;  %v157_v33 = vpop.f32.mrf.mxu3 }
  0x97   :  { %v187_v34 = vmul.f32 %v157_v33, %v157_v33  ;;  %v98_v35 = vpop.f32.mrf.mxu0 }
  0x98   :  { %v173_v36 = vmul.f32 %v98_v35, %v98_v35  ;;  %v145_v37 = vpop.f32.mrf.mxu1 }
  0x99   :  { %v716_v38 = vadd.f32 %v187_v34, %v177_v32  ;;  %v183_v39 = vmul.f32 %v145_v37, %v145_v37 }
  0x9b   :  { %v543_v40 = vpop.eup %542  ;;  %v718_v41 = vadd.f32 %v183_v39, %v173_v36  ;;  %544 = vrsqrt.f32 %v716_v38  ;;  %vm269_vm3 = vcmp.eq.f32.partialorder %v716_v38, inf  ;;  %vm271_vm6 = vcmp.eq.f32.partialorder %v716_v38, 0.0 }
  0x9c   :  { %v203_v42 = vmul.f32 %v543_v40, %v713_v30 }
  0x9d   :  { %546 = vrsqrt.f32 %v718_v41  ;;  %v113_v43 = vpop.f32.mrf.mxu2  ;;  %vm221_vm4 = vcmp.eq.f32.partialorder %v718_v41, inf  ;;  %vm223_vm5 = vcmp.eq.f32.partialorder %v718_v41, 0.0 }
  0x9e   :  { %v178_v44 = vmul.f32 %v113_v43, %v113_v43  ;;  %v160_v45 = vpop.f32.mrf.mxu3  ;;  %v204_v46 = vmul.f32 %v543_v40, %v203_v42 }
  0x9f   :  { %v188_v47 = vmul.f32 %v160_v45, %v160_v45  ;;  %v101_v48 = vpop.f32.mrf.mxu0 }
  0xa0   :  { %v174_v49 = vmul.f32 %v101_v48, %v101_v48  ;;  %v148_v50 = vpop.f32.mrf.mxu1  ;;  %v205_v51 = vmul.f32 0.5, %v204_v46  ;;  %v272_v48 = vand.u32 2147483648, %v716_v38 }
  0xa1   :  { %v723_v52 = vadd.f32 %v188_v47, %v178_v44  ;;  %v184_v53 = vmul.f32 %v148_v50, %v148_v50  ;;  %v725_v54 = vpop.eup %544 }
  0xa2   :  { %v206_v55 = vsub.f32 1.5, %v205_v51  ;;  %v263_v60 = vmul.f32 %v725_v54, %v716_v38 }
  0xa3   :  { %v547_v56 = vpop.eup %546  ;;  %548 = vrsqrt.f32 %v723_v52  ;;  %v728_v57 = vadd.f32 %v184_v53, %v174_v49  ;;  %vm281_vm8 = vcmp.eq.f32.partialorder %v723_v52, inf  ;;  %vm283_vm11 = vcmp.eq.f32.partialorder %v723_v52, 0.0 }
  0xa4   :  { %v215_v58 = vmul.f32 %v547_v56, %v718_v41  ;;  %v207_v63 = vmul.f32 %v543_v40, %v206_v55  ;;  %v264_v8 = vmul.f32 %v725_v54, %v263_v60 }
  0xa5   :  { %550 = vrsqrt.f32 %v728_v57  ;;  %v116_v59 = vpop.f32.mrf.mxu2  ;;  %vm233_vm7 = vcmp.eq.f32.partialorder %v728_v57, inf  ;;  %vm235_vm9 = vcmp.eq.f32.partialorder %v728_v57, 0.0 }
  0xa6   :  { %v179_v61 = vmul.f32 %v116_v59, %v116_v59  ;;  %v163_v62 = vpop.f32.mrf.mxu3  ;;  %v216_v0 = vmul.f32 %v547_v56, %v215_v58  ;;  %v208_v9 = vmul.f32 %v207_v63, %v713_v30  ;;  %v265_v16 = vmul.f32 0.5, %v264_v8 }
  0xa7   :  { %v189_v1 = vmul.f32 %v163_v62, %v163_v62  ;;  %v104_v2 = vpop.f32.mrf.mxu0 }
  0xa8   :  { %v175_v3 = vmul.f32 %v104_v2, %v104_v2  ;;  %v151_v4 = vpop.f32.mrf.mxu1  ;;  %v217_v10 = vmul.f32 0.5, %v216_v0  ;;  %v210_v19 = vsel %vm209_vm1, %v713_v30, %v208_v9  ;;  %v266_v34 = vsub.f32 1.5, %v265_v16 }
  0xa9   :  { %v734_v5 = vpop.eup %548  ;;  %v736_v6 = vadd.f32 %v189_v1, %v179_v61  ;;  %v185_v7 = vmul.f32 %v151_v4, %v151_v4  ;;  %v754_v33 = vsel %vm211_vm2, %v212_v24, %v210_v19  ;;  %v284_v0 = vand.u32 2147483648, %v723_v52 }
  0xaa   :  { %v275_v13 = vmul.f32 %v734_v5, %v723_v52  ;;  %v218_v20 = vsub.f32 1.5, %v217_v10  ;;  %v762_v45 = vadd.f32 1e-08, %v754_v33  ;;  %v267_v47 = vmul.f32 %v725_v54, %v266_v34 }
  0xab   :  { %v551_v11 = vpop.eup %550  ;;  %552 = vrsqrt.f32 %v736_v6  ;;  %v741_v12 = vadd.f32 %v185_v7, %v175_v3  ;;  %v224_v54 = vand.u32 2147483648, %v718_v41  ;;  %v236_v16 = vand.u32 2147483648, %v728_v57 }
  0xac   :  { %v227_v14 = vmul.f32 %v551_v11, %v728_v57  ;;  %v276_v25 = vmul.f32 %v734_v5, %v275_v13  ;;  %v219_v35 = vmul.f32 %v547_v56, %v218_v20  ;;  %v268_v63 = vmul.f32 %v267_v47, %v716_v38 }
  0xad   :  { %554 = vrsqrt.f32 %v741_v12  ;;  %v119_v15 = vpop.f32.mrf.mxu2  ;;  %vm293_vm10 = vcmp.eq.f32.partialorder %v736_v6, inf  ;;  %vm295_vm12 = vcmp.eq.f32.partialorder %v736_v6, 0.0  ;;  %vm245_vm13 = vcmp.eq.f32.partialorder %v741_v12, inf }
  0xae   :  { %v180_v17 = vmul.f32 %v119_v15, %v119_v15  ;;  %v166_v18 = vpop.f32.mrf.mxu3  ;;  %v228_v21 = vmul.f32 %v551_v11, %v227_v14  ;;  %v277_v42 = vmul.f32 0.5, %v276_v25  ;;  %v220_v51 = vmul.f32 %v219_v35, %v718_v41 }
  0xaf   :  { %v190_v22 = vmul.f32 %v166_v18, %v166_v18  ;;  %v107_v23 = vpop.f32.mrf.mxu0  ;;  %vm247_vm14 = vcmp.eq.f32.partialorder %v741_v12, 0.0 }
  0xb0   :  { %v176_v26 = vmul.f32 %v107_v23, %v107_v23  ;;  %v154_v27 = vpop.f32.mrf.mxu1  ;;  %v229_v28 = vmul.f32 0.5, %v228_v21  ;;  %v278_v56 = vsub.f32 1.5, %v277_v42  ;;  %v222_v2 = vsel %vm221_vm4, %v718_v41, %v220_v51 }
  0xb1   :  { %v553_v29 = vpop.eup %552  ;;  %v752_v31 = vadd.f32 %v190_v22, %v180_v17  ;;  %v186_v32 = vmul.f32 %v154_v27, %v154_v27  ;;  %v792_v15 = vsel %vm223_vm5, %v224_v54, %v222_v2  ;;  %v270_v17 = vsel %vm269_vm3, %v716_v38, %v268_v63 }
  0xb2   :  { %v230_v36 = vsub.f32 1.5, %v229_v28  ;;  %v287_v37 = vmul.f32 %v553_v29, %v736_v6  ;;  %v279_v8 = vmul.f32 %v734_v5, %v278_v56  ;;  %v815_v25 = vsel %vm271_vm6, %v272_v48, %v270_v17 }
  0xb3   :  { %v555_v39 = vpop.eup %554  ;;  %556 = vrsqrt.f32 %v752_v31  ;;  %v758_v40 = vadd.f32 %v186_v32, %v176_v26  ;;  %v818_v26 = vadd.f32 1e-08, %v792_v15  ;;  %v248_v27 = vand.u32 2147483648, %v741_v12 }
  0xb4   :  { %v231_v43 = vmul.f32 %v551_v11, %v230_v36  ;;  %v239_v30 = vmul.f32 %v555_v39, %v741_v12  ;;  %v288_v44 = vmul.f32 %v553_v29, %v287_v37  ;;  %v280_v21 = vmul.f32 %v279_v8, %v723_v52 }
  0xb5   :  { %558 = vrsqrt.f32 %v758_v40  ;;  %v122_v46 = vpop.f32.mrf.mxu2  ;;  %v835_v42 = vadd.f32 1e-08, %v815_v25  ;;  %vm305_vm15 = vcmp.eq.f32.partialorder %v752_v31, inf  ;;  %vm257_vm0 = vcmp.eq.f32.partialorder %v758_v40, inf }
  0xb6   :  { %v181_v49 = vmul.f32 %v122_v46, %v122_v46  ;;  %v169_v50 = vpop.f32.mrf.mxu3  ;;  %v240_v53 = vmul.f32 %v555_v39, %v239_v30  ;;  %v289_v58 = vmul.f32 0.5, %v288_v44  ;;  %v232_v59 = vmul.f32 %v231_v43, %v728_v57 }
  0xb7   :  { %v191_v55 = vmul.f32 %v169_v50, %v169_v50  ;;  %560 = vrcp.f32 %v762_v45  ;;  %v282_v38 = vsel %vm281_vm8, %v723_v52, %v280_v21  ;;  %vm259_vm1 = vcmp.eq.f32.partialorder %v758_v40, 0.0 }
  0xb8   :  { %v241_v60 = vmul.f32 0.5, %v240_v53  ;;  %v290_v1 = vsub.f32 1.5, %v289_v58  ;;  %v234_v10 = vsel %vm233_vm7, %v728_v57, %v232_v59  ;;  %v851_v51 = vsel %vm283_vm11, %v284_v0, %v282_v38 }
  0xb9   :  { %v557_v61 = vpop.eup %556  ;;  %v775_v62 = vadd.f32 %v191_v55, %v181_v49  ;;  %v806_v20 = vsel %vm235_vm9, %v236_v16, %v234_v10  ;;  %v260_v49 = vand.u32 2147483648, %v758_v40  ;;  %v353_v53 = vand.u32 2147483648, %v762_v45 }
  0xba   :  { %v242_v3 = vsub.f32 1.5, %v241_v60  ;;  %v299_v4 = vmul.f32 %v557_v61, %v752_v31  ;;  %v291_v9 = vmul.f32 %v553_v29, %v290_v1  ;;  %v825_v36 = vadd.f32 1e-08, %v806_v20 }
  0xbb   :  { %v559_v7 = vpop.eup %558  ;;  %562 = vrsqrt.f32 %v775_v62  ;;  %vm307_vm3 = vcmp.eq.f32.partialorder %v752_v31, 0.0  ;;  %vm347_vm4 = vweird.f32 %v762_v45  ;;  %vm317_vm5 = vcmp.eq.f32.partialorder %v775_v62, inf }
  0xbc   :  { %v243_v11 = vmul.f32 %v555_v39, %v242_v3  ;;  %v251_v13 = vmul.f32 %v559_v7, %v758_v40  ;;  %v300_v14 = vmul.f32 %v557_v61, %v299_v4  ;;  %v292_v22 = vmul.f32 %v291_v9, %v736_v6 }
  0xbd   :  { %v799_v5 = vpop.eup %560  ;;  %v296_v39 = vand.u32 2147483648, %v736_v6  ;;  %564 = vrcp.f32 %v818_v26  ;;  %v320_v0 = vand.u32 2147483648, %v775_v62  ;;  %v354_v3 = vor.u32 1.1754944e-38, %v353_v53 }
  0xbe   :  { %v244_v18 = vmul.f32 %v243_v11, %v741_v12  ;;  %v252_v19 = vmul.f32 %v559_v7, %v251_v13  ;;  %v301_v41 = vmul.f32 0.5, %v300_v14  ;;  %v343_v23 = vmul.f32 %v799_v5, %v762_v45 }
  0xbf   :  { %v294_v37 = vsel %vm293_vm10, %v736_v6, %v292_v22  ;;  %566 = vrcp.f32 %v825_v36  ;;  %vm348_vm2 = vweird.f32 %v799_v5  ;;  %v308_v6 = vand.u32 2147483648, %v752_v31 }
  0xc0   :  { %v253_v24 = vmul.f32 0.5, %v252_v19  ;;  %v302_v28 = vsub.f32 1.5, %v301_v41  ;;  %v344_v29 = vsub.f32 1.0, %v343_v23  ;;  %v246_v32 = vsel %vm245_vm13, %v741_v12, %v244_v18  ;;  %vm880_vm6 = vmor %vm347_vm4, %vm348_vm2 }
  0xc1   :  { %v563_v57 = vpop.eup %562  ;;  %v842_v46 = vsel %vm247_vm14, %v248_v27, %v246_v32  ;;  %v855_v12 = vsel %vm295_vm12, %v296_v39, %v294_v37  ;;  %v366_v9 = vand.u32 2147483647, %v818_v26  ;;  %v368_v13 = vand.u32 2147483648, %v818_v26 }
  0xc2   :  { %v254_v34 = vsub.f32 1.5, %v253_v24  ;;  %v311_v35 = vmul.f32 %v563_v57, %v775_v62  ;;  %v345_v44 = vmul.f32 %v799_v5, %v344_v29  ;;  %v303_v47 = vmul.f32 %v557_v61, %v302_v28 }
  0xc3   :  { %v861_v58 = vadd.f32 1e-08, %v842_v46  ;;  %v565_v60 = vpop.eup %564  ;;  %v333_v61 = vadd.f32 1e-08, %v851_v51  ;;  %v334_v1 = vadd.f32 1e-08, %v855_v12  ;;  %vm362_vm8 = vweird.f32 %v818_v26 }
  0xc4   :  { %v255_v43 = vmul.f32 %v559_v7, %v254_v34  ;;  %v312_v30 = vmul.f32 %v563_v57, %v311_v35  ;;  %v346_v54 = vadd.f32 %v799_v5, %v345_v44  ;;  %v304_v52 = vmul.f32 %v303_v47, %v752_v31 }
  0xc5   :  { %v358_v4 = vmul.f32 %v565_v60, %v818_v26  ;;  %v567_v7 = vpop.eup %566  ;;  %568 = vrcp.f32 %v861_v58  ;;  %v381_v16 = vand.u32 2147483647, %v825_v36  ;;  %vm319_vm9 = vcmp.eq.f32.partialorder %v775_v62, 0.0 }
  0xc6   :  { %v256_v48 = vmul.f32 %v255_v43, %v758_v40  ;;  %v313_v50 = vmul.f32 0.5, %v312_v30  ;;  %v306_v10 = vsel %vm305_vm15, %v752_v31, %v304_v52  ;;  %v373_v14 = vmul.f32 %v567_v7, %v825_v36 }
  0xc7   :  { %v359_v11 = vsub.f32 1.0, %v358_v4  ;;  %vm363_vm10 = vweird.f32 %v565_v60  ;;  %v901_v19 = vsel %vm307_vm3, %v308_v6, %v306_v10  ;;  %vm904_vm11 = vcmp.eq.f32.partialorder %v366_v9, 8.507059e+37 }
  0xc8   :  { %v258_v55 = vsel %vm257_vm0, %v758_v40, %v256_v48  ;;  %v314_v56 = vsub.f32 1.5, %v313_v50  ;;  %v351_v40 = vand.u32 2147483647, %v762_v45  ;;  %v350_v45 = vsel %vm880_vm6, %v799_v5, %v346_v54  ;;  %vm364_vm13 = vmor %vm362_vm8, %vm363_vm10 }
  0xc9   :  { %v864_v59 = vsel %vm259_vm1, %v260_v49, %v258_v55  ;;  %v360_v5 = vmul.f32 %v565_v60, %v359_v11  ;;  %v374_v18 = vsub.f32 1.0, %v373_v14  ;;  %v383_v22 = vand.u32 2147483648, %v825_v36 }
  0xca   :  { %v871_v63 = vadd.f32 1e-08, %v864_v59  ;;  %v315_v8 = vmul.f32 %v563_v57, %v314_v56  ;;  %vm352_vm7 = vcmp.eq.f32.partialorder %v351_v40, 8.507059e+37  ;;  %v369_v24 = vor.u32 1.1754944e-38, %v368_v13 }
  0xcb   :  { %v355_v17 = vsel %vm352_vm7, %v354_v3, %v350_v45  ;;  %v361_v23 = vadd.f32 %v565_v60, %v360_v5  ;;  %v375_v57 = vmul.f32 %v567_v7, %v374_v18  ;;  %vm378_vm12 = vweird.f32 %v567_v7  ;;  %v569_v27 = vpop.eup %568 }
  0xcc   :  { %570 = vrcp.f32 %v871_v63  ;;  %v316_v41 = vmul.f32 %v315_v8, %v775_v62  ;;  %v356_v28 = vmul.f32 %v355_v17, %v835_v42  ;;  %vm377_vm14 = vweird.f32 %v825_v36 }
  0xcd   :  { %vm913_vm15 = vcmp.eq.f32.partialorder %v381_v16, 8.507059e+37  ;;  %v365_v29 = vsel %vm364_vm13, %v565_v60, %v361_v23  ;;  %v376_v32 = vadd.f32 %v567_v7, %v375_v57  ;;  %v388_v34 = vmul.f32 %v569_v27, %v861_v58  ;;  %vm379_vm0 = vmor %vm377_vm14, %vm378_vm12 }
  0xce   :  { %v396_v35 = vand.u32 2147483647, %v861_v58  ;;  %v318_v37 = vsel %vm317_vm5, %v775_v62, %v316_v41  ;;  %v370_v26 = vsel %vm904_vm11, %v369_v24, %v365_v29  ;;  %v384_v36 = vor.u32 1.1754944e-38, %v383_v22 }
  0xcf   :  { %v598_v39 = vmov 0.6931472   ;;  %v371_v42 = vmul.f32 %v370_v26, %v333_v61  ;;  %v380_v43 = vsel %vm379_vm0, %v567_v7, %v376_v32  ;;  %v389_v30 = vsub.f32 1.0, %v388_v34 }
  0xd0   :  { %572 = vrcp.f32 %v598_v39  ;;  %v385_v47 = vsel %vm913_vm15, %v384_v36, %v380_v43  ;;  %vm393_vm1 = vweird.f32 %v569_v27  ;;  %v398_v48 = vand.u32 2147483648, %v861_v58 }
  0xd1   :  { %574 = vlog2.f32 %v356_v28  ;;  %v386_v49 = vmul.f32 %v385_v47, %v334_v1  ;;  %v390_v50 = vmul.f32 %v569_v27, %v389_v30  ;;  %v930_v55 = vsel %vm319_vm9, %v320_v0, %v318_v37 }
  0xd2   :  { %v571_v38 = vpop.eup %570  ;;  %576 = vlog2.f32 %v371_v42  ;;  %vm392_vm2 = vweird.f32 %v861_v58  ;;  %v411_v56 = vand.u32 2147483647, %v871_v63  ;;  %v413_v54 = vand.u32 2147483648, %v871_v63 }
  0xd3   :  { %v403_v44 = vmul.f32 %v571_v38, %v871_v63  ;;  %v391_v52 = vadd.f32 %v569_v27, %v390_v50  ;;  %vm408_vm3 = vweird.f32 %v571_v38  ;;  %578 = vlog2.f32 %v386_v49  ;;  %vm394_vm4 = vmor %vm392_vm2, %vm393_vm1 }
  0xd4   :  { %v335_v61 = vadd.f32 1e-08, %v901_v19  ;;  %vm397_vm5 = vcmp.eq.f32.partialorder %v396_v35, 8.507059e+37  ;;  %v399_v40 = vor.u32 1.1754944e-38, %v398_v48  ;;  %vm407_vm6 = vweird.f32 %v871_v63 }
  0xd5   :  { %v404_v53 = vsub.f32 1.0, %v403_v44  ;;  %v395_v62 = vsel %vm394_vm4, %v569_v27, %v391_v52  ;;  %v336_v2 = vadd.f32 1e-08, %v930_v55  ;;  %vm409_vm7 = vmor %vm407_vm6, %vm408_vm3  ;;  %v414_v4 = vor.u32 1.1754944e-38, %v413_v54 }
  0xd6   :  { %v573_v60 = vpop.eup %572  ;;  %v400_v3 = vsel %vm397_vm5, %v399_v40, %v395_v62  ;;  %vm412_vm8 = vcmp.eq.f32.partialorder %v411_v56, 8.507059e+37  ;;  %v322_v5 = vsub.f32 %v754_v33, %v815_v25  ;;  %v323_v18 = vsub.f32 %v792_v15, %v851_v51 }
  0xd7   :  { %v405_v6 = vmul.f32 %v571_v38, %v404_v53  ;;  %v428_v58 = vmul.f32 0.6931472, %v573_v60  ;;  %v575_v1 = vpop.eup %574  ;;  %v401_v8 = vmul.f32 %v400_v3, %v335_v61  ;;  %vm432_vm9 = vweird.f32 %v573_v60 }
  0xd8   :  { %v577_v7 = vpop.eup %576  ;;  %v418_v16 = vmul.f32 0.6931472, %v575_v1  ;;  %v324_v21 = vsub.f32 %v806_v20, %v855_v12  ;;  %v327_v28 = vand.u32 2147483647, %v322_v5  ;;  %v328_v31 = vand.u32 2147483647, %v323_v18 }
  0xd9   :  { %v406_v0 = vadd.f32 %v571_v38, %v405_v6  ;;  %v429_v9 = vsub.f32 1.0, %v428_v58  ;;  %v579_v11 = vpop.eup %578  ;;  %580 = vlog2.f32 %v401_v8  ;;  %v420_v17 = vmul.f32 0.6931472, %v577_v7 }
  0xda   :  { %v422_v63 = vmul.f32 0.6931472, %v579_v11  ;;  %v325_v29 = vsub.f32 %v842_v46, %v901_v19  ;;  %v326_v15 = vsub.f32 %v864_v59, %v930_v55  ;;  %v329_v51 = vand.u32 2147483647, %v324_v21 }
  0xdb   :  { %v410_v45 = vsel %vm409_vm7, %v571_v38, %v406_v0  ;;  %v430_v14 = vmul.f32 %v573_v60, %v429_v9 }
  0xdc   :  { %v415_v10 = vsel %vm412_vm8, %v414_v4, %v410_v45  ;;  %v330_v36 = vand.u32 2147483647, %v325_v29  ;;  %v331_v30 = vand.u32 2147483647, %v326_v15 }
  0xdd   :  { %v416_v13 = vmul.f32 %v415_v10, %v336_v2  ;;  %v431_v41 = vadd.f32 %v573_v60, %v430_v14 }
  0xdf   :  { %582 = vlog2.f32 %v416_v13  ;;  %v433_v22 = vsel %vm432_vm9, %v573_v60, %v431_v41  ;;  %v581_v27 = vpop.eup %580 }
  0xe0   :  { %v434_v23 = vmul.f32 %v433_v22, %v418_v16  ;;  %v435_v24 = vmul.f32 %v433_v22, %v420_v17  ;;  %v436_v57 = vmul.f32 %v433_v22, %v422_v63  ;;  %v424_v32 = vmul.f32 0.6931472, %v581_v27 }
  0xe2   :  { %v439_v33 = vand.u32 2147483647, %v434_v23  ;;  %v440_v25 = vand.u32 2147483647, %v435_v24  ;;  %v441_v35 = vand.u32 2147483647, %v436_v57  ;;  %v437_v12 = vmul.f32 %v433_v22, %v424_v32 }
  0xe4   :  { %v449_v38 = vadd.f32 %v439_v33, %v327_v28  ;;  %v450_v37 = vadd.f32 %v440_v25, %v328_v31  ;;  %v451_v26 = vadd.f32 %v441_v35, %v329_v51  ;;  %v442_v42 = vand.u32 2147483647, %v437_v12 }
  0xe5   :  { %v583_v34 = vpop.eup %582 }
  0xe6   :  { %v426_v20 = vmul.f32 0.6931472, %v583_v34  ;;  %v472_v43 = vadd.f32 %v450_v37, %v449_v38  ;;  %v452_v19 = vadd.f32 %v442_v42, %v330_v36 }
  0xe8   :  { %v438_v39 = vmul.f32 %v433_v22, %v426_v20  ;;  %v473_v44 = vadd.f32 %v472_v43, %v451_v26 }
  0xea   :  { %v443_v46 = vand.u32 2147483647, %v438_v39  ;;  %v474_v48 = vadd.f32 %v473_v44, %v452_v19 }
  0xec   :  { %v453_v47 = vadd.f32 %v443_v46, %v331_v30 }
  0xee   :  { %v475_v49 = vadd.f32 %v474_v48, %v453_v47 }
  0xf0   :  { %476 = vadd.xlane.f32.xlu0 %v475_v49 }
 0x163   :  { %v477_v59 = vpop.xlane.xlu0 %476 }
 0x164   :  { %v478_v50 = vrot.slane %v477_v59, 4 }
 0x166   :  { %v479_v53 = vadd.f32 %v478_v50, %v477_v59 }
 0x168   :  { %v480_v55 = vrot.slane %v479_v53, 2 }
 0x16a   :  { %v481_v56 = vadd.f32 %v480_v55, %v479_v53 }
 0x16c   :  { %v482_v54 = vrot.slane %v481_v56, 1 }
 0x16e   :  { %v483_v52 = vadd.f32 %v482_v54, %v481_v56 }
 0x170   :  { %538 = vpush %v483_v52 }
 0x1a1   :  { %s539_s6 = spop %538 }
 0x1a2   :  { %486 = sst [smem:[#allocation3]] %s539_s6 }
 0x1a3   :  { %495 = dma.smem_to_hbm %s599_s7, 16, %s493_s5, [#allocation4]  }
 0x1a4   :  { %596 = dma.done.wait [#allocation4], 16  }
 0x1a5   :  { %597 = vsyncadd [#allocation4], 4294967280 }
 0x1a6   :  { %500 = sfence }
 0x1a7   :  { %501 = vsyncpa [#allocation4], 1 }

</bundles_post_ra>
